<compile_context>
chip_gen: v7x
topology: tpu7x:2x2x1
jax: 0.10.0
libtpu: 0.0.40
codegen_flags: <defaults>
</compile_context>

<pallas_src>
import functools

import jax
import jax.numpy as jnp
from jax.experimental import pallas as pl
from jax.experimental.pallas import tpu as pltpu


# ---------------------------------------------------------------------------
# Kernels
# ---------------------------------------------------------------------------

def _fused_kernel(x_ref, gamma_ref, beta_ref, gather_ref, scatter_ref, o_ref,
                  *, eps, inv_count):
    """Single pass: all rows of one feature tile resident.

    x_ref/o_ref: (N, Ft); gamma_ref/beta_ref: (1, Ft);
    gather_ref: (Dp, N) one-hot (row d flags rows of domain d);
    scatter_ref: (N, Dp) one-hot (row n flags domain n % D).
    """
    x = x_ref[...].astype(jnp.float32)
    g = gather_ref[...]
    s = scatter_ref[...]

    # Per-domain mean on the (idle) MXU, broadcast back to rows via scatter.
    mean = jnp.dot(g, x, preferred_element_type=jnp.float32) * inv_count       # (Dp, Ft)
    centered = x - jnp.dot(s, mean, preferred_element_type=jnp.float32)        # (N, Ft)
    var = jnp.dot(g, centered * centered,
                  preferred_element_type=jnp.float32) * inv_count              # (Dp, Ft)

    scale = gamma_ref[...].astype(jnp.float32) * jax.lax.rsqrt(var + eps)      # (Dp, Ft)
    scale_full = jnp.dot(s, scale, preferred_element_type=jnp.float32)         # (N, Ft)

    o_ref[...] = (centered * scale_full
                  + beta_ref[...].astype(jnp.float32)).astype(o_ref.dtype)


def _stats_kernel(x_ref, gamma_ref, beta_ref, gather_ref, scale_ref, shift_ref,
                  *, eps, inv_count):
    """Two-pass fallback, pass 1: accumulate per-domain sum / sum-of-squares
    across the row-tiled ("arbitrary") grid axis, convert to (scale, shift) on
    the last row step.  scale_ref/shift_ref: (Dp, Ft) resident accumulators."""
    r = pl.program_id(1)

    @pl.when(r == 0)
    def _init():
        scale_ref[...] = jnp.zeros_like(scale_ref)
        shift_ref[...] = jnp.zeros_like(shift_ref)

    x = x_ref[...].astype(jnp.float32)
    g = gather_ref[0]                                                    # (Dp, Rt)
    scale_ref[...] += jnp.dot(g, x, preferred_element_type=jnp.float32)
    shift_ref[...] += jnp.dot(g, x * x, preferred_element_type=jnp.float32)

    @pl.when(r == pl.num_programs(1) - 1)
    def _finalize():
        mean = scale_ref[...] * inv_count
        # TODO(synk): E[x^2]-mean^2 loses precision when |mean| >> std; a third
        # (centered) pass would match the fused path's numerics exactly.
        var = jnp.maximum(shift_ref[...] * inv_count - mean * mean, 0.0)
        sc = gamma_ref[...].astype(jnp.float32) * jax.lax.rsqrt(var + eps)
        scale_ref[...] = sc
        shift_ref[...] = beta_ref[...].astype(jnp.float32) - mean * sc


def _apply_kernel(x_ref, scatter_ref, scale_ref, shift_ref, o_ref):
    """Two-pass fallback, pass 2: out = x * scale[n % D] + shift[n % D]."""
    x = x_ref[...].astype(jnp.float32)
    s = scatter_ref[0]                                                   # (Rt, Dp)
    scale_full = jnp.dot(s, scale_ref[...], preferred_element_type=jnp.float32)
    shift_full = jnp.dot(s, shift_ref[...], preferred_element_type=jnp.float32)
    o_ref[...] = (x * scale_full + shift_full).astype(o_ref.dtype)


# ---------------------------------------------------------------------------
# Tile selection
# ---------------------------------------------------------------------------

def _vmem_limit_bytes():
    """Generation-aware scoped-VMEM budget: ~3/4 of physical VMEM, capped at
    96 MiB (=> ~96 MiB on 128-MiB v5e/v6e parts, ~48 MiB on 64-MiB v7x)."""
    phys = 64 << 20
    try:
        info = pltpu.get_tpu_info()
        phys = int(getattr(info, "vmem_capacity_bytes", phys) or phys)
    except Exception:
        pass
    return min(phys * 3 // 4, 96 << 20)


def _choose_fused_f_tile(f_pad, n_rows, itemsize, dp, limit):
    """Largest lane-dense feature tile such that (2 in + 2 out pipeline buffers)
    + ~4 f32 in-kernel temporaries fit the budget.  None -> two-pass path."""
    per_elem = 4 * itemsize + 4 * 4
    budget = limit - 64 * dp * n_rows - (2 << 20)     # one-hot operands + headroom
    if budget <= 0:
        return None
    cands = [t for t in range(128, f_pad + 1, 128)
             if f_pad % t == 0 and per_elem * n_rows * t <= budget]
    if not cands:
        return None
    if len(cands) > 1:
        # Keep >= 2 feature tiles so the "parallel" grid axis can shard across
        # both TensorCores on v7x (cost elsewhere: ~0.35us/step, negligible).
        cands = [t for t in cands if t < f_pad] or cands
    return cands[-1]


def _choose_two_pass_tiles(f_pad, n_rows, itemsize, limit):
    ft_cands = [t for t in range(128, min(f_pad, 512) + 1, 128) if f_pad % t == 0]
    ft = ft_cands[-1] if ft_cands else f_pad
    per_elem = 4 * itemsize + 3 * 4
    rt = None
    r = 8
    while r <= n_rows:
        if n_rows % r == 0 and per_elem * r * ft <= limit:
            rt = r
        r += 8
    if rt is None:
        rt = next((c for c in range(8, n_rows + 1, 8) if n_rows % c == 0), n_rows)
    return rt, ft


# ---------------------------------------------------------------------------
# Wrapper
# ---------------------------------------------------------------------------

def dial_batchnorm1d(x, gamma, beta, *, num_domains, eps=1e-5,
                     force_row_tiling=False, row_tile=None, f_tile=None):
    """Training-mode DIALBatchNorm1d forward.

    x: (N, F), N divisible by num_domains; row b*num_domains + d is the b-th
    sample of domain d.  gamma, beta: (F,) shared affine parameters.
    """
    # TODO(synk): eval-mode path (running-stats bn[0]) and the momentum updates
    # of per-domain running_mean/var are not implemented; the module defaults to
    # training mode, whose forward output this reproduces.
    N, F_in = x.shape
    D = num_domains
    assert N % D == 0
    B = N // D
    Dp = -(-D // 8) * 8                      # pad domain axis to a sublane multiple

    # Pad the feature axis to a multiple of 128 so stores are never masked.
    F = -(-F_in // 128) * 128
    if F != F_in:
        x = jnp.pad(x, ((0, 0), (0, F - F_in)))
        gamma = jnp.pad(gamma, (0, F - F_in), constant_values=1.0)
        beta = jnp.pad(beta, (0, F - F_in))
    gamma2 = gamma.reshape(1, F)
    beta2 = beta.reshape(1, F)

    # One-hot domain gather/scatter operands (tiny, built host-side).
    dom = jnp.arange(N, dtype=jnp.int32) % D
    ids = jnp.arange(Dp, dtype=jnp.int32)
    gather = (dom[None, :] == ids[:, None]).astype(jnp.float32)     # (Dp, N)
    scatter = jnp.transpose(gather)                                 # (N, Dp)

    itemsize = jnp.dtype(x.dtype).itemsize
    limit = _vmem_limit_bytes()
    inv_count = 1.0 / B

    use_two_pass = bool(force_row_tiling)
    ft = f_tile
    if not use_two_pass:
        if ft is None:
            ft = _choose_fused_f_tile(F, N, itemsize, Dp, limit)
        if ft is None:
            use_two_pass = True

    if not use_two_pass:
        assert F % ft == 0 and ft % 128 == 0
        out = pl.pallas_call(
            functools.partial(_fused_kernel, eps=eps, inv_count=inv_count),
            out_shape=jax.ShapeDtypeStruct((N, F), x.dtype),
            grid_spec=pltpu.PrefetchScalarGridSpec(
                num_scalar_prefetch=0,
                grid=(F // ft,),
                in_specs=[
                    pl.BlockSpec((N, ft), lambda f: (0, f)),
                    pl.BlockSpec((1, ft), lambda f: (0, f)),
                    pl.BlockSpec((1, ft), lambda f: (0, f)),
                    pl.BlockSpec((Dp, N), lambda f: (0, 0)),
                    pl.BlockSpec((N, Dp), lambda f: (0, 0)),
                ],
                out_specs=pl.BlockSpec((N, ft), lambda f: (0, f)),
            ),
            compiler_params=pltpu.CompilerParams(
                dimension_semantics=("parallel",),
                vmem_limit_bytes=limit,
            ),
        )(x, gamma2, beta2, gather, scatter)
        return out[:, :F_in] if F != F_in else out

    # ---- two-pass row-tiled fallback (N too large for a resident tile) ----
    if row_tile is None or ft is None:
        auto_rt, auto_ft = _choose_two_pass_tiles(F, N, itemsize, limit)
        rt = row_tile if row_tile is not None else auto_rt
        ft = ft if ft is not None else auto_ft
    else:
        rt = row_tile
    assert N % rt == 0 and (rt % 8 == 0 or rt == N)
    assert F % ft == 0 and ft % 128 == 0
    num_r = N // rt

    # Per-row-tile one-hot operands (handles row tiles not divisible by D).
    gather3 = gather.reshape(Dp, num_r, rt).transpose(1, 0, 2)      # (num_r, Dp, rt)
    scatter3 = scatter.reshape(num_r, rt, Dp)                       # (num_r, rt, Dp)

    scale_d, shift_d = pl.pallas_call(
        functools.partial(_stats_kernel, eps=eps, inv_count=inv_count),
        out_shape=(jax.ShapeDtypeStruct((Dp, F), jnp.float32),
                   jax.ShapeDtypeStruct((Dp, F), jnp.float32)),
        grid_spec=pltpu.PrefetchScalarGridSpec(
            num_scalar_prefetch=0,
            grid=(F // ft, num_r),
            in_specs=[
                pl.BlockSpec((rt, ft), lambda f, r: (r, f)),
                pl.BlockSpec((1, ft), lambda f, r: (0, f)),
                pl.BlockSpec((1, ft), lambda f, r: (0, f)),
                pl.BlockSpec((1, Dp, rt), lambda f, r: (r, 0, 0)),
            ],
            out_specs=[
                pl.BlockSpec((Dp, ft), lambda f, r: (0, f)),
                pl.BlockSpec((Dp, ft), lambda f, r: (0, f)),
            ],
        ),
        compiler_params=pltpu.CompilerParams(
            dimension_semantics=("parallel", "arbitrary"),
            vmem_limit_bytes=limit,
        ),
    )(x, gamma2, beta2, gather3)

    out = pl.pallas_call(
        _apply_kernel,
        out_shape=jax.ShapeDtypeStruct((N, F), x.dtype),
        grid_spec=pltpu.PrefetchScalarGridSpec(
            num_scalar_prefetch=0,
            grid=(F // ft, num_r),
            in_specs=[
                pl.BlockSpec((rt, ft), lambda f, r: (r, f)),
                pl.BlockSpec((1, rt, Dp), lambda f, r: (r, 0, 0)),
                pl.BlockSpec((Dp, ft), lambda f, r: (0, f)),
                pl.BlockSpec((Dp, ft), lambda f, r: (0, f)),
            ],
            out_specs=pl.BlockSpec((rt, ft), lambda f, r: (r, f)),
        ),
        compiler_params=pltpu.CompilerParams(
            dimension_semantics=("parallel", "parallel"),
            vmem_limit_bytes=limit,
        ),
    )(x, scatter3, scale_d, shift_d)
    return out[:, :F_in] if F != F_in else out


# ---------------------------------------------------------------------------
# Reference + tests
# ---------------------------------------------------------------------------

def _reference(x, gamma, beta, *, num_domains, eps=1e-5):
    N, F = x.shape
    B = N // num_domains
    xd = x.reshape(B, num_domains, F).transpose(1, 0, 2)    # (D, B, F)
    mean = xd.mean(axis=1, keepdims=True)
    var = ((xd - mean) ** 2).mean(axis=1, keepdims=True)
    xhat = (xd - mean) / jnp.sqrt(var + eps)
    out = xhat * gamma[None, None, :] + beta[None, None, :]
    return out.transpose(1, 0, 2).reshape(N, F)


if __name__ == "__main__":
    key = jax.random.PRNGKey(0)
    k1, k2, k3 = jax.random.split(key, 3)

    def _check(x, gamma, beta, num_domains, **kw):
        out = jax.block_until_ready(
            dial_batchnorm1d(x, gamma, beta, num_domains=num_domains, eps=1e-5, **kw))
        ref = _reference(x, gamma, beta, num_domains=num_domains, eps=1e-5)
        assert out.shape == x.shape and out.dtype == x.dtype
        err = float(jnp.max(jnp.abs(out - ref)))
        assert jnp.allclose(out, ref, atol=1e-4, rtol=1e-4), err

    # Case 1: ragged F (padded to 128 inside), default-init gamma/beta, fused path.
    D, Fq, Bq = 2, 32, 8
    x1 = jax.random.normal(k1, (D * Bq, Fq), dtype=jnp.float32)
    _check(x1, jnp.ones((Fq,), jnp.float32), jnp.zeros((Fq,), jnp.float32), D)

    # Case 2: lane-dense F with >=2 feature tiles, non-trivial gamma/beta, fused path.
    F2 = 4096
    x2 = jax.random.normal(k2, (D * Bq, F2), dtype=jnp.float32) + 0.5
    g2 = 1.0 + 0.1 * jnp.arange(F2, dtype=jnp.float32)
    b2 = 0.01 * jnp.arange(F2, dtype=jnp.float32)
    _check(x2, g2, b2, D)

    # Case 3: num_domains=3 (does not divide the 8-sublane tile), fused path.
    D3, F3 = 3, 256
    x3 = jax.random.normal(k3, (D3 * Bq, F3), dtype=jnp.float32) - 0.25
    g3 = 1.0 + 0.05 * jnp.arange(F3, dtype=jnp.float32)
    b3 = 0.02 * jnp.arange(F3, dtype=jnp.float32)
    _check(x3, g3, b3, D3)

    # Case 4: forced two-pass row-tiled fallback (row tile not divisible by D).
    _check(x3, g3, b3, D3, force_row_tiling=True, row_tile=8, f_tile=128)

    print("KERNEL_OK")
</pallas_src>

<mosaic_0001>
module attributes {stable_mosaic.version = 11 : i64} {
  func.func @_fused_kernel(%arg0: i32, %arg1: memref<16x128xf32, #tpu.memory_space<vmem>>, %arg2: memref<1x128xf32, #tpu.memory_space<vmem>>, %arg3: memref<1x128xf32, #tpu.memory_space<vmem>>, %arg4: memref<8x16xf32, #tpu.memory_space<vmem>>, %arg5: memref<16x8xf32, #tpu.memory_space<vmem>>, %arg6: memref<16x128xf32, #tpu.memory_space<vmem>>) attributes {dimension_semantics = [#tpu.dimension_semantics<parallel>], iteration_bounds = array<i64: 1>, scalar_prefetch = 0 : i64, scratch_operands = 0 : i64, tpu.core_type = #tpu.core_type<tc>, window_params = [{transform_indices = @transform_0, window_bounds = array<i64: 16, 128>}, {transform_indices = @transform_1, window_bounds = array<i64: 1, 128>}, {transform_indices = @transform_2, window_bounds = array<i64: 1, 128>}, {pipeline_mode = #tpu.pipeline_mode<synchronous>, transform_indices = @transform_3, window_bounds = array<i64: 8, 16>}, {pipeline_mode = #tpu.pipeline_mode<synchronous>, transform_indices = @transform_4, window_bounds = array<i64: 16, 8>}, {transform_indices = @transform_5, window_bounds = array<i64: 16, 128>}]} {
    %c0 = arith.constant 0 : index
    %c0_0 = arith.constant 0 : index
    %0 = vector.load %arg1[%c0, %c0_0] : memref<16x128xf32, #tpu.memory_space<vmem>>, vector<16x128xf32>
    %c0_1 = arith.constant 0 : index
    %c0_2 = arith.constant 0 : index
    %1 = vector.load %arg4[%c0_1, %c0_2] : memref<8x16xf32, #tpu.memory_space<vmem>>, vector<8x16xf32>
    %c0_3 = arith.constant 0 : index
    %c0_4 = arith.constant 0 : index
    %2 = vector.load %arg5[%c0_3, %c0_4] : memref<16x8xf32, #tpu.memory_space<vmem>>, vector<16x8xf32>
    %cst = arith.constant dense<0.000000e+00> : vector<8x128xf32>
    %3 = tpu.matmul %1, %0, %cst {dimension_numbers = #tpu.dot_dimension_numbers<[1], [0], [0], [1], [0, 0, 1, 1], [], []>} : vector<8x16xf32>, vector<16x128xf32>, vector<8x128xf32> -> vector<8x128xf32>
    %cst_5 = arith.constant 1.250000e-01 : f32
    %4 = vector.broadcast %cst_5 : f32 to vector<8x128xf32>
    %5 = arith.mulf %3, %4 : vector<8x128xf32>
    %cst_6 = arith.constant dense<0.000000e+00> : vector<16x128xf32>
    %6 = tpu.matmul %2, %5, %cst_6 {dimension_numbers = #tpu.dot_dimension_numbers<[1], [0], [0], [1], [0, 0, 1, 1], [], []>} : vector<16x8xf32>, vector<8x128xf32>, vector<16x128xf32> -> vector<16x128xf32>
    %7 = arith.subf %0, %6 : vector<16x128xf32>
    %8 = arith.mulf %7, %7 : vector<16x128xf32>
    %cst_7 = arith.constant dense<0.000000e+00> : vector<8x128xf32>
    %9 = tpu.matmul %1, %8, %cst_7 {dimension_numbers = #tpu.dot_dimension_numbers<[1], [0], [0], [1], [0, 0, 1, 1], [], []>} : vector<8x16xf32>, vector<16x128xf32>, vector<8x128xf32> -> vector<8x128xf32>
    %cst_8 = arith.constant 1.250000e-01 : f32
    %10 = vector.broadcast %cst_8 : f32 to vector<8x128xf32>
    %11 = arith.mulf %9, %10 : vector<8x128xf32>
    %c0_9 = arith.constant 0 : index
    %c0_10 = arith.constant 0 : index
    %12 = vector.load %arg2[%c0_9, %c0_10] : memref<1x128xf32, #tpu.memory_space<vmem>>, vector<1x128xf32>
    %cst_11 = arith.constant 9.99999974E-6 : f32
    %13 = vector.broadcast %cst_11 : f32 to vector<8x128xf32>
    %14 = arith.addf %11, %13 : vector<8x128xf32>
    %15 = math.rsqrt %14 : vector<8x128xf32>
    %16 = vector.broadcast %12 : vector<1x128xf32> to vector<8x128xf32>
    %17 = arith.mulf %16, %15 : vector<8x128xf32>
    %cst_12 = arith.constant dense<0.000000e+00> : vector<16x128xf32>
    %18 = tpu.matmul %2, %17, %cst_12 {dimension_numbers = #tpu.dot_dimension_numbers<[1], [0], [0], [1], [0, 0, 1, 1], [], []>} : vector<16x8xf32>, vector<8x128xf32>, vector<16x128xf32> -> vector<16x128xf32>
    %19 = arith.mulf %7, %18 : vector<16x128xf32>
    %c0_13 = arith.constant 0 : index
    %c0_14 = arith.constant 0 : index
    %20 = vector.load %arg3[%c0_13, %c0_14] : memref<1x128xf32, #tpu.memory_space<vmem>>, vector<1x128xf32>
    %21 = vector.broadcast %20 : vector<1x128xf32> to vector<16x128xf32>
    %22 = arith.addf %19, %21 : vector<16x128xf32>
    %c0_15 = arith.constant 0 : index
    %c0_16 = arith.constant 0 : index
    %23 = vector.load %arg6[%c0_15, %c0_16] : memref<16x128xf32, #tpu.memory_space<vmem>>, vector<16x128xf32>
    tpu.vector_store %arg6[%c0_15, %c0_16], %22 {strides = array<i32>} : memref<16x128xf32, #tpu.memory_space<vmem>>, vector<16x128xf32>,
    return
  }
  func.func @transform_0(%arg0: i32) -> (i32, i32) {
    %c0_i32 = arith.constant 0 : i32
    %c0_i32_0 = arith.constant 0 : i32
    return %c0_i32, %arg0 : i32, i32
  }
  func.func @transform_1(%arg0: i32) -> (i32, i32) {
    %c0_i32 = arith.constant 0 : i32
    %c0_i32_0 = arith.constant 0 : i32
    return %c0_i32, %arg0 : i32, i32
  }
  func.func @transform_2(%arg0: i32) -> (i32, i32) {
    %c0_i32 = arith.constant 0 : i32
    %c0_i32_0 = arith.constant 0 : i32
    return %c0_i32, %arg0 : i32, i32
  }
  func.func @transform_3(%arg0: i32) -> (i32, i32) {
    %c0_i32 = arith.constant 0 : i32
    %c0_i32_0 = arith.constant 0 : i32
    %c0_i32_1 = arith.constant 0 : i32
    return %c0_i32, %c0_i32_0 : i32, i32
  }
  func.func @transform_4(%arg0: i32) -> (i32, i32) {
    %c0_i32 = arith.constant 0 : i32
    %c0_i32_0 = arith.constant 0 : i32
    %c0_i32_1 = arith.constant 0 : i32
    return %c0_i32, %c0_i32_0 : i32, i32
  }
  func.func @transform_5(%arg0: i32) -> (i32, i32) {
    %c0_i32 = arith.constant 0 : i32
    %c0_i32_0 = arith.constant 0 : i32
    return %c0_i32, %arg0 : i32, i32
  }
}

</mosaic_0001>

<bundles_post_ra>
// kernel: tpu_custom_call.1
= control target key start
LH: loop header
LB: loop body
LE: loop exit
PB: predicated region body
PF: predicated region fallthrough
CT: control target
= control target key end

     0   :  { %v454_v2 = vmov 0.0|0.0   ;;  %vm455_vm0 = vmmov 0   ;;  %v456_v4 = vmov 0.0   ;;  %s531_s0 = inlined_call_operand.vmem [shape: f32[16,128], index: 0, kind: input, shape index: {}]   ;;  %s532_s1 = inlined_call_operand.vmem [shape: f32[1,128], index: 1, kind: input, shape index: {}]   ;;  %s533_s2 = inlined_call_operand.vmem [shape: f32[1,128], index: 2, kind: input, shape index: {}]   ;;  %s534_s3 = inlined_call_operand.vmem [shape: f32[8,16], index: 3, kind: input, shape index: {}]   ;;  %s535_s4 = inlined_call_operand.vmem [shape: f32[16,8], index: 4, kind: input, shape index: {}]   ;;  %s536_s5 = inlined_call_operand.hbm [shape: f32[16,128], index: 5, kind: output, shape index: {}]  }
   0x1   :  { %v21_v0 = vld [vmem:[%s531_s0] sm:$0xff]  ;;  %v22_v1 = vld [vmem:[%s531_s0 + $0x8] sm:$0xff]  ;;  %416 = vmatprep.subr.bf16.mxu0 %v454_v2  ;;  %396 = vmatprep.mubr.msk.f32.mxu0 %vm455_vm0, %v456_v4 }
   0x2   :  { %v417_v3 = vpack.c.bf16 %v22_v1, %v21_v0 }
   0x3   :  { %10 = vsyncpa [#allocation3], 0  ;;  %v23_v5 = vld [vmem:[%s534_s3] sm:$0xff]  ;;  %vm26_vm1 = vcmask 130048   ;;  %vm101_vm2 = vcmask 64512   ;;  %v25_v10 = vld [vmem:[%s535_s4 + $0x8] sm:$0xff] }
   0x4   :  { %418 = vmatpush3.bf16.msra.mxu0 %v417_v3  ;;  %v24_v6 = vld [vmem:[%s535_s4] sm:$0xff]  ;;  %s457_s29 = smov [#allocation2]  }
   0x5   :  { %401 = vmatprep.mubr.msk.f32.mxu1 %vm101_vm2, %v24_v6  ;;  %v376_v22 = vld [vmem:[%s532_s1] ss:$0 sm:$0xff]  ;;  %s361_s30 = sshll.u32 %s457_s29, 4  ;;  %s362_s30 = int_to_ptr.vmem [resolvable:$true] %s361_s30 }
   0x6   :  { %v379_v26 = vld [vmem:[%s533_s2] ss:$0 sm:$0xff]  ;;  %s430_s1 = scalar_lea.vmem %s362_s30, 256  ;;  %p435_p1 = scmp.lt.s32.totalorder %s362_s30, %s362_s30 }
   0x7   :  { %397 = vmatmul.mubr.msk.f32.vlgmr.msra.gmra.mrb[0].mxu0 %vm26_vm1, %v23_v5  ;;  %p431_p0 = scmp.ne.s32.totalorder %s362_s30, %s430_s1  ;;  %p436_p2 = scmp.lt.s32.totalorder %s430_s1, %s430_s1 }
   0x8   :  { %413 = vmatprep.mubr.msk.f32.mxu0 %vm101_vm2, %v24_v6 }
   0x9   :  { %p437_p3 = por %p436_p2, %p435_p1 }
   0xb   :  { %p438_p4 = pnand %p437_p3, %p431_p0 }
  0xda   :  { %v96_v7 = vpop.f32.mrb[0].mxu0 }
  0xdb   :  { %v100_v8 = vmul.f32 0.125, %v96_v7  ;;  %v398_v9 = vpop.f32.mrb[1].mxu0 }
  0xdd   :  { %399 = vmatprep.subr.mxu1 %v100_v8 }
  0xde   :  { %400 = vmatpush3.msra.mxu1 %v100_v8 }
  0xdf   :  { %402 = vmatmul.mubr.msk.f32.vlgmr.msra.gmra.mrb[0].mxu1 %vm101_vm2, %v25_v10  ;;  %419 = vmatprep.subr.bf16.mxu1 %v454_v2 }
  0xe0   :  { %408 = vmatprep.mubr.msk.f32.mxu1 %vm455_vm0, %v456_v4 }
 0x1b2   :  { %v403_v11 = vpop.f32.mrb[0].mxu1 }
 0x1b3   :  { %v184_v12 = vsub.f32 %v22_v1, %v403_v11  ;;  %v174_v13 = vpop.f32.mrb[1].mxu1 }
 0x1b4   :  { %v183_v14 = vsub.f32 %v21_v0, %v174_v13 }
 0x1b5   :  { %v186_v15 = vmul.f32 %v184_v12, %v184_v12 }
 0x1b6   :  { %v185_v16 = vmul.f32 %v183_v14, %v183_v14 }
 0x1b8   :  { %v420_v17 = vpack.c.bf16 %v186_v15, %v185_v16 }
 0x1ba   :  { %421 = vmatpush3.bf16.msra.mxu1 %v420_v17 }
 0x1bd   :  { %409 = vmatmul.mubr.msk.f32.vlgmr.msra.gmra.mrb[2].mxu1 %vm26_vm1, %v23_v5 }
 0x290   :  { %v253_v18 = vpop.f32.mrb[2].mxu1 }
 0x291   :  { %v257_v19 = vmul.f32 0.125, %v253_v18  ;;  %v410_v20 = vpop.f32.mrb[3].mxu1 }
 0x293   :  { %v259_v21 = vadd.f32 1e-05, %v257_v19 }
 0x295   :  { %428 = vrsqrt.f32 %v259_v21 }
 0x29f   :  { %v429_v23 = vpop.eup %428 }
 0x2a0   :  { %v267_v24 = vmul.f32 %v429_v23, %v376_v22 }
 0x2a2   :  { %411 = vmatprep.subr.mxu0 %v267_v24 }
 0x2a3   :  { %412 = vmatpush3.msra.mxu0 %v267_v24 }
 0x2a4   :  { %414 = vmatmul.mubr.msk.f32.vlgmr.msra.gmra.mrb[2].mxu0 %vm101_vm2, %v25_v10 }
 0x377   :  { %v415_v25 = vpop.f32.mrb[2].mxu0 }
 0x378   :  { %v344_v27 = vmul.f32 %v415_v25, %v184_v12  ;;  %v334_v28 = vpop.f32.mrb[3].mxu0 }
 0x379   :  { %v343_v29 = vmul.f32 %v334_v28, %v183_v14 }
 0x37a   :  { %v353_v30 = vadd.f32 %v379_v26, %v344_v27 }
 0x37b   :  { %v352_v31 = vadd.f32 %v379_v26, %v343_v29 }
 0x37c   :  { %355 = vst [vmem:[#allocation2 + $0x8] sm:$0xff] %v353_v30 }
 0x37d   :  { %354 = vst [vmem:[#allocation2] sm:$0xff] %v352_v31 }
 0x37e   :  { %441 = shalt.err (!%p438_p4)
}
 0x37f   :  { %s442_s2 = scalar_lea.hbm %s536_s5, 256 }
 0x380   :  { %p443_p5 = scmp.ne.s32.totalorder %s536_s5, %s442_s2  ;;  %p446_p6 = scmp.lt.u32.totalorder %s442_s2, %s536_s5 }
 0x382   :  { %p448_p7 = pnand %p446_p6, %p443_p5 }
 0x384   :  { %451 = shalt.err (!%p448_p7)
}
 0x385   :  { %s458_s12 = smov 128   ;;  %s459_s13 = smov 8  }
 0x386   :  { %367 = dma.vmem_to_hbm [thread:$0]  %s362_s30, 256, %s536_s5, [#allocation3], %s458_s12, %s458_s12, %s459_s13  }
 0x387   :  { %452 = dma.done.wait [#allocation3], 256  }
 0x388   :  { %453 = vsyncadd [#allocation3], 4294967040 }
 0x389   :  { %371 = vsyncpa [#allocation3], 1 }

</bundles_post_ra>
